<compile_context>
chip_gen: v7x
topology: tpu7x:2x2x1
jax: 0.10.0
libtpu: 0.0.40
codegen_flags: <defaults>
</compile_context>

<pallas_src>
import math

import jax
import jax.numpy as jnp
from jax.experimental import pallas as pl
from jax.experimental.pallas import tpu as pltpu

D_VIS_IN = 400          # fc_vis input dim (ResNet feature size)
D = 256                 # hidden size
HEADS = 16              # SelfAttention(16, 256, 256, ...)
HEAD_DIM = D // HEADS   # 16
LN_EPS = 1e-12          # BERT-style LayerNorm eps
WEIGHT_DTYPE = jnp.bfloat16


# ----------------------------------------------------------------------------
# Fused kernel: (folded fc_vis + SelfAttention + residual) -> LayerNorm -> concat
# ----------------------------------------------------------------------------
def _fused_forward_kernel(vis_ref, cli_ref, w_vis_ref, w_cli_ref, vec_ref, glob_ref):
    # Modality order matches torch concat: m=0 mri->SA2, m=1 pet->SA3, m=2 cli->SA1.
    for m in range(3):                              # unrolled at trace time
        if m < 2:
            x = vis_ref[m]                          # (TB, 400) f32 activations
            w = w_vis_ref[m]                        # (400, 256) bf16 fully-folded weight
        else:
            x = cli_ref[...]                        # (TB, 256) f32
            w = w_cli_ref[...]                      # (256, 256) bf16 (Wv@Wd + I)
        vecs = vec_ref[m]                           # (8, 256) f32: rows 0=bias,1=gamma,2=beta
        bias, gamma, beta = vecs[0:1], vecs[1:2], vecs[2:3]

        # One MXU matmul per modality: bf16 operands, f32 accumulation.
        res = jnp.dot(x.astype(WEIGHT_DTYPE), w,
                      preferred_element_type=jnp.float32) + bias

        # LayerNorm — all elementwise math in f32 (two-pass variance kept on purpose).
        mean = jnp.mean(res, axis=-1, keepdims=True)
        var = jnp.mean((res - mean) ** 2, axis=-1, keepdims=True)
        out = gamma * (res - mean) * jax.lax.rsqrt(var + LN_EPS) + beta

        glob_ref[:, m * D:(m + 1) * D] = out        # lane-dense 768-wide slab (6 full vregs)


# ----------------------------------------------------------------------------
# Triple_model_Fusion.forward (feature-level) wrapper
# ----------------------------------------------------------------------------
def triple_model_fusion_forward(mri_feat, pet_feat, cli_feat, packed):
    # TODO(synk): self.Resnet (get_pretrained_Vision_Encoder) and self.Table
    # (TransformerEncoder) definitions are not provided; this kernel consumes
    # their output features (400-d vision, 256-d tabular) directly.
    B = mri_feat.shape[0]
    TB = min(B, 512)                                 # batch tile (fits v7x 32 MiB scoped VMEM)
    grid = (pl.cdiv(B, TB),)

    vis = jnp.stack([mri_feat, pet_feat], axis=0)    # (2, B, 400): one stacked vision operand

    glob = pl.pallas_call(
        _fused_forward_kernel,
        grid=grid,
        out_shape=jax.ShapeDtypeStruct((B, 3 * D), jnp.float32),
        in_specs=[
            pl.BlockSpec((2, TB, D_VIS_IN), lambda i: (0, i, 0)),   # stacked mri/pet feats
            pl.BlockSpec((TB, D), lambda i: (i, 0)),                # cli feats
            pl.BlockSpec((2, D_VIS_IN, D), lambda i: (0, 0, 0)),    # folded vision weights
            pl.BlockSpec((D, D), lambda i: (0, 0)),                 # folded cli weight
            pl.BlockSpec((3, 8, D), lambda i: (0, 0, 0)),           # bias/gamma/beta slab
        ],
        out_specs=pl.BlockSpec((TB, 3 * D), lambda i: (i, 0)),
        compiler_params=pltpu.CompilerParams(dimension_semantics=("parallel",)),
    )(vis, cli_feat, packed["w_vis"], packed["w_cli"], packed["vec"])

    mri_feature = glob[:, None, 0 * D:1 * D]         # SA2(fc_vis(mri))  (B, 1, 256)
    pet_feature = glob[:, None, 1 * D:2 * D]         # SA3(fc_vis(pet))  (B, 1, 256)
    cli_feature = glob[:, None, 2 * D:3 * D]         # SA1(cli)          (B, 1, 256)
    global_feature = glob[:, None, :]                # (B, 1, 768)

    # TODO(synk): classify_head DenseNet(layer_num=(6,12,24,16), growth_rate=16,
    # in_channels=1, classes=2) definition not provided; the concatenated global
    # feature is returned in its place.
    output = global_feature
    return mri_feature, pet_feature, cli_feature, output


# ----------------------------------------------------------------------------
# Parameter construction (original layout) + trace-time packing for the kernel
# ----------------------------------------------------------------------------
def init_params(key):
    std = 0.02
    k_vis, kb_vis, k1, k2, k3 = jax.random.split(key, 5)

    def sa_block(k):
        ks = jax.random.split(k, 10)
        return dict(
            wq=std * jax.random.normal(ks[0], (D, D), jnp.float32),
            wk=std * jax.random.normal(ks[1], (D, D), jnp.float32),
            wv=std * jax.random.normal(ks[2], (D, D), jnp.float32),
            wd=std * jax.random.normal(ks[3], (D, D), jnp.float32),
            bq=std * jax.random.normal(ks[4], (D,), jnp.float32),
            bk=std * jax.random.normal(ks[5], (D,), jnp.float32),
            bv=std * jax.random.normal(ks[6], (D,), jnp.float32),
            bd=std * jax.random.normal(ks[7], (D,), jnp.float32),
            gamma=1.0 + std * jax.random.normal(ks[8], (D,), jnp.float32),
            beta=std * jax.random.normal(ks[9], (D,), jnp.float32),
        )

    return dict(
        w_vis=std * jax.random.normal(k_vis, (D_VIS_IN, D), jnp.float32),
        b_vis=std * jax.random.normal(kb_vis, (D,), jnp.float32),
        SA1=sa_block(k1), SA2=sa_block(k2), SA3=sa_block(k3),
    )


def pack_params(p, weight_dtype=WEIGHT_DTYPE):
    """Fold fc_vis + (Wv@Wd) + residual into one weight/bias per modality."""
    eye = jnp.eye(D, dtype=jnp.float32)

    def fold(blk):
        w = blk["wv"] @ blk["wd"] + eye                       # Wv@Wd + I  (residual fold)
        b = blk["bv"] @ blk["wd"] + blk["bd"]                 # bv@Wd + bd
        return w, b

    w2, b2 = fold(p["SA2"])      # mri
    w3, b3 = fold(p["SA3"])      # pet
    w1, b1 = fold(p["SA1"])      # cli

    w_vis_fused = jnp.stack([p["w_vis"] @ w2, p["w_vis"] @ w3], axis=0)  # (2, 400, 256)
    bias_mri = p["b_vis"] @ w2 + b2
    bias_pet = p["b_vis"] @ w3 + b3
    bias_cli = b1

    def vec_slab(bias, blk):
        rows = jnp.stack([bias, blk["gamma"], blk["beta"]], axis=0)      # (3, 256)
        return jnp.concatenate([rows, jnp.zeros((5, D), jnp.float32)], axis=0)  # (8, 256)

    vec = jnp.stack([vec_slab(bias_mri, p["SA2"]),
                     vec_slab(bias_pet, p["SA3"]),
                     vec_slab(bias_cli, p["SA1"])], axis=0)              # (3, 8, 256)

    return dict(
        w_vis=w_vis_fused.astype(weight_dtype),    # bf16 in HBM (halves weight DMA)
        w_cli=w1.astype(weight_dtype),             # bf16
        vec=vec,                                   # f32 (VPU path stays f32)
    )


# ----------------------------------------------------------------------------
# Pure-JAX reference (full un-simplified SelfAttention math for validation)
# ----------------------------------------------------------------------------
def _ref_self_attention(x, blk):
    B = x.shape[0]
    q = x @ blk["wq"] + blk["bq"]
    k = x @ blk["wk"] + blk["bk"]
    v = x @ blk["wv"] + blk["bv"]
    qh = q.reshape(B, 1, HEADS, HEAD_DIM).transpose(0, 2, 1, 3)
    kh = k.reshape(B, 1, HEADS, HEAD_DIM).transpose(0, 2, 1, 3)
    vh = v.reshape(B, 1, HEADS, HEAD_DIM).transpose(0, 2, 1, 3)
    scores = (qh @ kh.transpose(0, 1, 3, 2)) / math.sqrt(HEAD_DIM)
    probs = jax.nn.softmax(scores, axis=-1)
    ctx = (probs @ vh).transpose(0, 2, 1, 3).reshape(B, D)
    hidden = ctx @ blk["wd"] + blk["bd"]
    res = hidden + x
    mean = res.mean(-1, keepdims=True)
    var = ((res - mean) ** 2).mean(-1, keepdims=True)
    return blk["gamma"] * (res - mean) / jnp.sqrt(var + LN_EPS) + blk["beta"]


def reference_forward(mri_feat, pet_feat, cli_feat, p):
    mri_fc = mri_feat @ p["w_vis"] + p["b_vis"]
    pet_fc = pet_feat @ p["w_vis"] + p["b_vis"]
    mri_o = _ref_self_attention(mri_fc, p["SA2"])[:, None, :]
    pet_o = _ref_self_attention(pet_fc, p["SA3"])[:, None, :]
    cli_o = _ref_self_attention(cli_feat, p["SA1"])[:, None, :]
    glob = jnp.concatenate([mri_o, pet_o, cli_o], axis=-1)
    return mri_o, pet_o, cli_o, glob


if __name__ == "__main__":
    key = jax.random.PRNGKey(0)
    k_mri, k_pet, k_cli, k_params = jax.random.split(key, 4)

    B = 2
    mri_feat = jax.random.normal(k_mri, (B, D_VIS_IN), jnp.float32)  # ResNet(mri) features
    pet_feat = jax.random.normal(k_pet, (B, D_VIS_IN), jnp.float32)  # ResNet(pet) features
    cli_feat = jax.random.normal(k_cli, (B, D), jnp.float32)         # Table(cli) features

    params = init_params(k_params)
    packed = pack_params(params)

    outs = triple_model_fusion_forward(mri_feat, pet_feat, cli_feat, packed)
    outs = jax.block_until_ready(outs)

    refs = reference_forward(mri_feat, pet_feat, cli_feat, params)
    # bf16 weight storage => loosen tolerance vs. the f32 reference (per perf review).
    for o, r in zip(outs, refs):
        assert o.shape == r.shape, (o.shape, r.shape)
        assert jnp.allclose(o, r, atol=2e-2, rtol=2e-2), float(jnp.abs(o - r).max())

    print("KERNEL_OK")
</pallas_src>

<mosaic_0001>
module attributes {stable_mosaic.version = 11 : i64} {
  func.func @_fused_forward_kernel(%arg0: i32, %arg1: memref<2x2x400xf32, #tpu.memory_space<vmem>>, %arg2: memref<2x256xf32, #tpu.memory_space<vmem>>, %arg3: memref<2x400x256xbf16, #tpu.memory_space<vmem>>, %arg4: memref<256x256xbf16, #tpu.memory_space<vmem>>, %arg5: memref<3x8x256xf32, #tpu.memory_space<vmem>>, %arg6: memref<2x768xf32, #tpu.memory_space<vmem>>) attributes {dimension_semantics = [#tpu.dimension_semantics<parallel>], iteration_bounds = array<i64: 1>, scalar_prefetch = 0 : i64, scratch_operands = 0 : i64, tpu.core_type = #tpu.core_type<tc>, window_params = [{transform_indices = @transform_0, window_bounds = array<i64: 2, 2, 400>}, {transform_indices = @transform_1, window_bounds = array<i64: 2, 256>}, {pipeline_mode = #tpu.pipeline_mode<synchronous>, transform_indices = @transform_2, window_bounds = array<i64: 2, 400, 256>}, {pipeline_mode = #tpu.pipeline_mode<synchronous>, transform_indices = @transform_3, window_bounds = array<i64: 256, 256>}, {pipeline_mode = #tpu.pipeline_mode<synchronous>, transform_indices = @transform_4, window_bounds = array<i64: 3, 8, 256>}, {transform_indices = @transform_5, window_bounds = array<i64: 2, 768>}]} {
    %c0 = arith.constant 0 : index
    %c0_0 = arith.constant 0 : index
    %c0_1 = arith.constant 0 : index
    %0 = vector.load %arg1[%c0, %c0_0, %c0_1] : memref<2x2x400xf32, #tpu.memory_space<vmem>>, vector<1x2x400xf32>
    %1 = vector.shape_cast %0 : vector<1x2x400xf32> to vector<2x400xf32>
    %c0_2 = arith.constant 0 : index
    %c0_3 = arith.constant 0 : index
    %c0_4 = arith.constant 0 : index
    %2 = vector.load %arg3[%c0_2, %c0_3, %c0_4] : memref<2x400x256xbf16, #tpu.memory_space<vmem>>, vector<1x400x256xbf16>
    %3 = vector.shape_cast %2 : vector<1x400x256xbf16> to vector<400x256xbf16>
    %c0_5 = arith.constant 0 : index
    %c0_6 = arith.constant 0 : index
    %c0_7 = arith.constant 0 : index
    %4 = vector.load %arg5[%c0_5, %c0_6, %c0_7] : memref<3x8x256xf32, #tpu.memory_space<vmem>>, vector<1x8x256xf32>
    %5 = vector.shape_cast %4 : vector<1x8x256xf32> to vector<8x256xf32>
    %6 = vector.extract_strided_slice %5 {offsets = [0, 0], sizes = [1, 256], strides = [1, 1]} : vector<8x256xf32> to vector<1x256xf32>
    %7 = vector.extract_strided_slice %5 {offsets = [1, 0], sizes = [1, 256], strides = [1, 1]} : vector<8x256xf32> to vector<1x256xf32>
    %8 = vector.extract_strided_slice %5 {offsets = [2, 0], sizes = [1, 256], strides = [1, 1]} : vector<8x256xf32> to vector<1x256xf32>
    %9 = arith.truncf %1 : vector<2x400xf32> to vector<2x400xbf16>
    %cst = arith.constant dense<0.000000e+00> : vector<2x256xf32>
    %10 = tpu.matmul %9, %3, %cst {dimension_numbers = #tpu.dot_dimension_numbers<[1], [0], [0], [1], [0, 0, 1, 1], [], []>} : vector<2x400xbf16>, vector<400x256xbf16>, vector<2x256xf32> -> vector<2x256xf32>
    %11 = vector.broadcast %6 : vector<1x256xf32> to vector<2x256xf32>
    %12 = arith.addf %10, %11 : vector<2x256xf32>
    %cst_8 = arith.constant dense<0.000000e+00> : vector<2xf32>
    %13 = vector.multi_reduction <add>, %12, %cst_8 [1] : vector<2x256xf32> to vector<2xf32>
    %14 = vector.shape_cast %13 : vector<2xf32> to vector<2x1xf32>
    %cst_9 = arith.constant 2.560000e+02 : f32
    %15 = vector.broadcast %cst_9 : f32 to vector<2x1xf32>
    %16 = arith.divf %14, %15 : vector<2x1xf32>
    %17 = vector.broadcast %16 : vector<2x1xf32> to vector<2x256xf32>
    %18 = arith.subf %12, %17 : vector<2x256xf32>
    %19 = arith.mulf %18, %18 : vector<2x256xf32>
    %cst_10 = arith.constant dense<0.000000e+00> : vector<2xf32>
    %20 = vector.multi_reduction <add>, %19, %cst_10 [1] : vector<2x256xf32> to vector<2xf32>
    %21 = vector.shape_cast %20 : vector<2xf32> to vector<2x1xf32>
    %cst_11 = arith.constant 2.560000e+02 : f32
    %22 = vector.broadcast %cst_11 : f32 to vector<2x1xf32>
    %23 = arith.divf %21, %22 : vector<2x1xf32>
    %24 = vector.broadcast %16 : vector<2x1xf32> to vector<2x256xf32>
    %25 = arith.subf %12, %24 : vector<2x256xf32>
    %26 = vector.broadcast %7 : vector<1x256xf32> to vector<2x256xf32>
    %27 = arith.mulf %26, %25 : vector<2x256xf32>
    %cst_12 = arith.constant 9.99999996E-13 : f32
    %28 = vector.broadcast %cst_12 : f32 to vector<2x1xf32>
    %29 = arith.addf %23, %28 : vector<2x1xf32>
    %30 = math.rsqrt %29 : vector<2x1xf32>
    %31 = vector.broadcast %30 : vector<2x1xf32> to vector<2x256xf32>
    %32 = arith.mulf %27, %31 : vector<2x256xf32>
    %33 = vector.broadcast %8 : vector<1x256xf32> to vector<2x256xf32>
    %34 = arith.addf %32, %33 : vector<2x256xf32>
    %c0_13 = arith.constant 0 : index
    %c0_14 = arith.constant 0 : index
    %35 = vector.load %arg6[%c0_13, %c0_14] : memref<2x768xf32, #tpu.memory_space<vmem>>, vector<2x256xf32>
    tpu.vector_store %arg6[%c0_13, %c0_14], %34 {strides = array<i32>} : memref<2x768xf32, #tpu.memory_space<vmem>>, vector<2x256xf32>,
    %c1 = arith.constant 1 : index
    %c0_15 = arith.constant 0 : index
    %c0_16 = arith.constant 0 : index
    %36 = vector.load %arg1[%c1, %c0_15, %c0_16] : memref<2x2x400xf32, #tpu.memory_space<vmem>>, vector<1x2x400xf32>
    %37 = vector.shape_cast %36 : vector<1x2x400xf32> to vector<2x400xf32>
    %c1_17 = arith.constant 1 : index
    %c0_18 = arith.constant 0 : index
    %c0_19 = arith.constant 0 : index
    %38 = vector.load %arg3[%c1_17, %c0_18, %c0_19] : memref<2x400x256xbf16, #tpu.memory_space<vmem>>, vector<1x400x256xbf16>
    %39 = vector.shape_cast %38 : vector<1x400x256xbf16> to vector<400x256xbf16>
    %c1_20 = arith.constant 1 : index
    %c0_21 = arith.constant 0 : index
    %c0_22 = arith.constant 0 : index
    %40 = vector.load %arg5[%c1_20, %c0_21, %c0_22] : memref<3x8x256xf32, #tpu.memory_space<vmem>>, vector<1x8x256xf32>
    %41 = vector.shape_cast %40 : vector<1x8x256xf32> to vector<8x256xf32>
    %42 = vector.extract_strided_slice %41 {offsets = [0, 0], sizes = [1, 256], strides = [1, 1]} : vector<8x256xf32> to vector<1x256xf32>
    %43 = vector.extract_strided_slice %41 {offsets = [1, 0], sizes = [1, 256], strides = [1, 1]} : vector<8x256xf32> to vector<1x256xf32>
    %44 = vector.extract_strided_slice %41 {offsets = [2, 0], sizes = [1, 256], strides = [1, 1]} : vector<8x256xf32> to vector<1x256xf32>
    %45 = arith.truncf %37 : vector<2x400xf32> to vector<2x400xbf16>
    %cst_23 = arith.constant dense<0.000000e+00> : vector<2x256xf32>
    %46 = tpu.matmul %45, %39, %cst_23 {dimension_numbers = #tpu.dot_dimension_numbers<[1], [0], [0], [1], [0, 0, 1, 1], [], []>} : vector<2x400xbf16>, vector<400x256xbf16>, vector<2x256xf32> -> vector<2x256xf32>
    %47 = vector.broadcast %42 : vector<1x256xf32> to vector<2x256xf32>
    %48 = arith.addf %46, %47 : vector<2x256xf32>
    %cst_24 = arith.constant dense<0.000000e+00> : vector<2xf32>
    %49 = vector.multi_reduction <add>, %48, %cst_24 [1] : vector<2x256xf32> to vector<2xf32>
    %50 = vector.shape_cast %49 : vector<2xf32> to vector<2x1xf32>
    %cst_25 = arith.constant 2.560000e+02 : f32
    %51 = vector.broadcast %cst_25 : f32 to vector<2x1xf32>
    %52 = arith.divf %50, %51 : vector<2x1xf32>
    %53 = vector.broadcast %52 : vector<2x1xf32> to vector<2x256xf32>
    %54 = arith.subf %48, %53 : vector<2x256xf32>
    %55 = arith.mulf %54, %54 : vector<2x256xf32>
    %cst_26 = arith.constant dense<0.000000e+00> : vector<2xf32>
    %56 = vector.multi_reduction <add>, %55, %cst_26 [1] : vector<2x256xf32> to vector<2xf32>
    %57 = vector.shape_cast %56 : vector<2xf32> to vector<2x1xf32>
    %cst_27 = arith.constant 2.560000e+02 : f32
    %58 = vector.broadcast %cst_27 : f32 to vector<2x1xf32>
    %59 = arith.divf %57, %58 : vector<2x1xf32>
    %60 = vector.broadcast %52 : vector<2x1xf32> to vector<2x256xf32>
    %61 = arith.subf %48, %60 : vector<2x256xf32>
    %62 = vector.broadcast %43 : vector<1x256xf32> to vector<2x256xf32>
    %63 = arith.mulf %62, %61 : vector<2x256xf32>
    %cst_28 = arith.constant 9.99999996E-13 : f32
    %64 = vector.broadcast %cst_28 : f32 to vector<2x1xf32>
    %65 = arith.addf %59, %64 : vector<2x1xf32>
    %66 = math.rsqrt %65 : vector<2x1xf32>
    %67 = vector.broadcast %66 : vector<2x1xf32> to vector<2x256xf32>
    %68 = arith.mulf %63, %67 : vector<2x256xf32>
    %69 = vector.broadcast %44 : vector<1x256xf32> to vector<2x256xf32>
    %70 = arith.addf %68, %69 : vector<2x256xf32>
    %c0_29 = arith.constant 0 : index
    %c256 = arith.constant 256 : index
    %71 = vector.load %arg6[%c0_29, %c256] : memref<2x768xf32, #tpu.memory_space<vmem>>, vector<2x256xf32>
    tpu.vector_store %arg6[%c0_29, %c256], %70 {strides = array<i32>} : memref<2x768xf32, #tpu.memory_space<vmem>>, vector<2x256xf32>,
    %c0_30 = arith.constant 0 : index
    %c0_31 = arith.constant 0 : index
    %72 = vector.load %arg2[%c0_30, %c0_31] : memref<2x256xf32, #tpu.memory_space<vmem>>, vector<2x256xf32>
    %c0_32 = arith.constant 0 : index
    %c0_33 = arith.constant 0 : index
    %73 = vector.load %arg4[%c0_32, %c0_33] : memref<256x256xbf16, #tpu.memory_space<vmem>>, vector<256x256xbf16>
    %c2 = arith.constant 2 : index
    %c0_34 = arith.constant 0 : index
    %c0_35 = arith.constant 0 : index
    %74 = vector.load %arg5[%c2, %c0_34, %c0_35] : memref<3x8x256xf32, #tpu.memory_space<vmem>>, vector<1x8x256xf32>
    %75 = vector.shape_cast %74 : vector<1x8x256xf32> to vector<8x256xf32>
    %76 = vector.extract_strided_slice %75 {offsets = [0, 0], sizes = [1, 256], strides = [1, 1]} : vector<8x256xf32> to vector<1x256xf32>
    %77 = vector.extract_strided_slice %75 {offsets = [1, 0], sizes = [1, 256], strides = [1, 1]} : vector<8x256xf32> to vector<1x256xf32>
    %78 = vector.extract_strided_slice %75 {offsets = [2, 0], sizes = [1, 256], strides = [1, 1]} : vector<8x256xf32> to vector<1x256xf32>
    %79 = arith.truncf %72 : vector<2x256xf32> to vector<2x256xbf16>
    %cst_36 = arith.constant dense<0.000000e+00> : vector<2x256xf32>
    %80 = tpu.matmul %79, %73, %cst_36 {dimension_numbers = #tpu.dot_dimension_numbers<[1], [0], [0], [1], [0, 0, 1, 1], [], []>} : vector<2x256xbf16>, vector<256x256xbf16>, vector<2x256xf32> -> vector<2x256xf32>
    %81 = vector.broadcast %76 : vector<1x256xf32> to vector<2x256xf32>
    %82 = arith.addf %80, %81 : vector<2x256xf32>
    %cst_37 = arith.constant dense<0.000000e+00> : vector<2xf32>
    %83 = vector.multi_reduction <add>, %82, %cst_37 [1] : vector<2x256xf32> to vector<2xf32>
    %84 = vector.shape_cast %83 : vector<2xf32> to vector<2x1xf32>
    %cst_38 = arith.constant 2.560000e+02 : f32
    %85 = vector.broadcast %cst_38 : f32 to vector<2x1xf32>
    %86 = arith.divf %84, %85 : vector<2x1xf32>
    %87 = vector.broadcast %86 : vector<2x1xf32> to vector<2x256xf32>
    %88 = arith.subf %82, %87 : vector<2x256xf32>
    %89 = arith.mulf %88, %88 : vector<2x256xf32>
    %cst_39 = arith.constant dense<0.000000e+00> : vector<2xf32>
    %90 = vector.multi_reduction <add>, %89, %cst_39 [1] : vector<2x256xf32> to vector<2xf32>
    %91 = vector.shape_cast %90 : vector<2xf32> to vector<2x1xf32>
    %cst_40 = arith.constant 2.560000e+02 : f32
    %92 = vector.broadcast %cst_40 : f32 to vector<2x1xf32>
    %93 = arith.divf %91, %92 : vector<2x1xf32>
    %94 = vector.broadcast %86 : vector<2x1xf32> to vector<2x256xf32>
    %95 = arith.subf %82, %94 : vector<2x256xf32>
    %96 = vector.broadcast %77 : vector<1x256xf32> to vector<2x256xf32>
    %97 = arith.mulf %96, %95 : vector<2x256xf32>
    %cst_41 = arith.constant 9.99999996E-13 : f32
    %98 = vector.broadcast %cst_41 : f32 to vector<2x1xf32>
    %99 = arith.addf %93, %98 : vector<2x1xf32>
    %100 = math.rsqrt %99 : vector<2x1xf32>
    %101 = vector.broadcast %100 : vector<2x1xf32> to vector<2x256xf32>
    %102 = arith.mulf %97, %101 : vector<2x256xf32>
    %103 = vector.broadcast %78 : vector<1x256xf32> to vector<2x256xf32>
    %104 = arith.addf %102, %103 : vector<2x256xf32>
    %c0_42 = arith.constant 0 : index
    %c512 = arith.constant 512 : index
    %105 = vector.load %arg6[%c0_42, %c512] : memref<2x768xf32, #tpu.memory_space<vmem>>, vector<2x256xf32>
    tpu.vector_store %arg6[%c0_42, %c512], %104 {strides = array<i32>} : memref<2x768xf32, #tpu.memory_space<vmem>>, vector<2x256xf32>,
    return
  }
  func.func @transform_0(%arg0: i32) -> (i32, i32, i32) {
    %c0_i32 = arith.constant 0 : i32
    %c0_i32_0 = arith.constant 0 : i32
    %c0_i32_1 = arith.constant 0 : i32
    return %c0_i32, %arg0, %c0_i32_0 : i32, i32, i32
  }
  func.func @transform_1(%arg0: i32) -> (i32, i32) {
    %c0_i32 = arith.constant 0 : i32
    %c0_i32_0 = arith.constant 0 : i32
    return %arg0, %c0_i32 : i32, i32
  }
  func.func @transform_2(%arg0: i32) -> (i32, i32, i32) {
    %c0_i32 = arith.constant 0 : i32
    %c0_i32_0 = arith.constant 0 : i32
    %c0_i32_1 = arith.constant 0 : i32
    %c0_i32_2 = arith.constant 0 : i32
    return %c0_i32, %c0_i32_0, %c0_i32_1 : i32, i32, i32
  }
  func.func @transform_3(%arg0: i32) -> (i32, i32) {
    %c0_i32 = arith.constant 0 : i32
    %c0_i32_0 = arith.constant 0 : i32
    %c0_i32_1 = arith.constant 0 : i32
    return %c0_i32, %c0_i32_0 : i32, i32
  }
  func.func @transform_4(%arg0: i32) -> (i32, i32, i32) {
    %c0_i32 = arith.constant 0 : i32
    %c0_i32_0 = arith.constant 0 : i32
    %c0_i32_1 = arith.constant 0 : i32
    %c0_i32_2 = arith.constant 0 : i32
    return %c0_i32, %c0_i32_0, %c0_i32_1 : i32, i32, i32
  }
  func.func @transform_5(%arg0: i32) -> (i32, i32) {
    %c0_i32 = arith.constant 0 : i32
    %c0_i32_0 = arith.constant 0 : i32
    return %arg0, %c0_i32 : i32, i32
  }
}

</mosaic_0001>

<bundles_post_ra>
// kernel: tpu_custom_call.1
= control target key start
LH: loop header
LB: loop body
LE: loop exit
PB: predicated region body
PF: predicated region fallthrough
CT: control target
= control target key end

     0   :  { %10 = vsyncpa [#allocation3], 0  ;;  %s2081_s0 = inlined_call_operand.hbm [shape: f32[2,2,400], index: 0, kind: input, shape index: {}]   ;;  %s2082_s1 = inlined_call_operand.hbm [shape: f32[2,256], index: 1, kind: input, shape index: {}]   ;;  %s2083_s2 = inlined_call_operand.hbm [shape: bf16[2,400,256], index: 2, kind: input, shape index: {}]   ;;  %s2084_s3 = inlined_call_operand.hbm [shape: bf16[256,256], index: 3, kind: input, shape index: {}]   ;;  %s2085_s4 = inlined_call_operand.hbm [shape: f32[3,8,256], index: 4, kind: input, shape index: {}]   ;;  %s2086_s5 = inlined_call_operand.hbm [shape: f32[2,768], index: 5, kind: output, shape index: {}]  }
   0x1   :  { %11 = vsyncpa [#allocation6], 0 }
   0x2   :  { %12 = vsyncpa [#allocation9], 0 }
   0x3   :  { %13 = vsyncpa [#allocation4], 0  ;;  %s1874_s18 = smov [#allocation5]   ;;  %s1734_s22 = scalar_lea.hbm %s2082_s1, 64 }
   0x4   :  { %s32_s19 = sshll.u32 %s1874_s18, 4  ;;  %p1735_p0 = scmp.ne.s32.totalorder %s2082_s1, %s1734_s22  ;;  %s33_s19 = int_to_ptr.vmem [resolvable:$true] %s32_s19 }
   0x5   :  { %p1738_p1 = scmp.lt.u32.totalorder %s1734_s22, %s2082_s1 }
   0x7   :  { %p1740_p2 = pnand %p1738_p1, %p1735_p0 }
   0x9   :  { %1743 = shalt.err (!%p1740_p2)
}
   0xa   :  { %s1744_s27 = scalar_lea.vmem %s33_s19, 64  ;;  %p1749_p4 = scmp.lt.s32.totalorder %s33_s19, %s33_s19 }
   0xb   :  { %p1745_p3 = scmp.ne.s32.totalorder %s33_s19, %s1744_s27  ;;  %p1750_p5 = scmp.lt.s32.totalorder %s1744_s27, %s1744_s27 }
   0xd   :  { %p1751_p6 = por %p1750_p5, %p1749_p4 }
   0xf   :  { %p1752_p7 = pnand %p1751_p6, %p1745_p3 }
  0x11   :  { %1755 = shalt.err (!%p1752_p7)
}
  0x12   :  { %35 = dma.hbm_to_vmem [thread:$0]  %s2082_s1, 64, %s33_s19, [#allocation6]  }
  0x13   :  { %s1875_s30 = smov [#allocation8]   ;;  %s1876_s7 = smov [#allocation2]  }
  0x14   :  { %s53_s6 = sshll.u32 %s1875_s30, 4  ;;  %s19_s8 = sshll.u32 %s1876_s7, 4  ;;  %s54_s6 = int_to_ptr.vmem [resolvable:$true] %s53_s6  ;;  %s20_s8 = int_to_ptr.vmem [resolvable:$true] %s19_s8 }
  0x15   :  { %s1756_s11 = scalar_lea.hbm %s2084_s3, 4096 }
  0x16   :  { %p1757_p8 = scmp.ne.s32.totalorder %s2084_s3, %s1756_s11  ;;  %p1760_p9 = scmp.lt.u32.totalorder %s1756_s11, %s2084_s3 }
  0x18   :  { %p1762_p10 = pnand %p1760_p9, %p1757_p8 }
  0x1a   :  { %1765 = shalt.err (!%p1762_p10)
}
  0x1b   :  { %s1766_s1 = scalar_lea.vmem %s54_s6, 4096  ;;  %p1771_p12 = scmp.lt.s32.totalorder %s54_s6, %s54_s6 }
  0x1c   :  { %p1767_p11 = scmp.ne.s32.totalorder %s54_s6, %s1766_s1  ;;  %p1772_p13 = scmp.lt.s32.totalorder %s1766_s1, %s1766_s1 }
  0x1e   :  { %p1773_p0 = por %p1772_p13, %p1771_p12 }
  0x20   :  { %p1774_p1 = pnand %p1773_p0, %p1767_p11 }
  0x22   :  { %1777 = shalt.err (!%p1774_p1)
}
  0x23   :  { %s1877_s16 = smov 128   ;;  %s1878_s17 = smov 8  }
  0x24   :  { %59 = dma.hbm_to_vmem [thread:$0]  %s2084_s3, 4096, %s54_s6, [#allocation9], %s1877_s16, %s1877_s16, %s1878_s17  }
  0x25   :  { %s1778_s22 = scalar_lea.hbm %s2081_s0, 256 }
  0x26   :  { %p1779_p2 = scmp.ne.s32.totalorder %s2081_s0, %s1778_s22  ;;  %p1782_p3 = scmp.lt.u32.totalorder %s1778_s22, %s2081_s0 }
  0x28   :  { %p1784_p4 = pnand %p1782_p3, %p1779_p2 }
  0x2a   :  { %1787 = shalt.err (!%p1784_p4)
}
  0x2b   :  { %s1788_s27 = scalar_lea.vmem %s20_s8, 256  ;;  %p1793_p6 = scmp.lt.s32.totalorder %s20_s8, %s20_s8 }
  0x2c   :  { %p1789_p5 = scmp.ne.s32.totalorder %s20_s8, %s1788_s27  ;;  %p1794_p7 = scmp.lt.s32.totalorder %s1788_s27, %s1788_s27 }
  0x2e   :  { %p1795_p8 = por %p1794_p7, %p1793_p6 }
  0x30   :  { %p1796_p9 = pnand %p1795_p8, %p1789_p5 }
  0x32   :  { %1799 = shalt.err (!%p1796_p9)
}
  0x33   :  { %25 = dma.hbm_to_vmem [thread:$0]  %s2081_s0, 256, %s20_s8, [#allocation3], %s1877_s16, %s1877_s16, %s1878_s17  }
  0x34   :  { %s1879_s29 = smov [#allocation7]   ;;  %s1880_s6 = smov [#allocation10]  }
  0x35   :  { %s41_s30 = sshll.u32 %s1879_s29, 4  ;;  %s65_s7 = sshll.u32 %s1880_s6, 4  ;;  %s42_s30 = int_to_ptr.vmem [resolvable:$true] %s41_s30  ;;  %s66_s7 = int_to_ptr.vmem [resolvable:$true] %s65_s7 }
  0x36   :  { %s1800_s11 = scalar_lea.hbm %s2083_s2, 12800 }
  0x37   :  { %p1801_p10 = scmp.ne.s32.totalorder %s2083_s2, %s1800_s11  ;;  %p1804_p11 = scmp.lt.u32.totalorder %s1800_s11, %s2083_s2 }
  0x39   :  { %p1806_p12 = pnand %p1804_p11, %p1801_p10 }
  0x3b   :  { %1809 = shalt.err (!%p1806_p12)
}
  0x3c   :  { %s1810_s0 = scalar_lea.vmem %s42_s30, 12800  ;;  %p1815_p0 = scmp.lt.s32.totalorder %s42_s30, %s42_s30 }
  0x3d   :  { %p1811_p13 = scmp.ne.s32.totalorder %s42_s30, %s1810_s0  ;;  %p1816_p1 = scmp.lt.s32.totalorder %s1810_s0, %s1810_s0 }
  0x3f   :  { %p1817_p2 = por %p1816_p1, %p1815_p0 }
  0x41   :  { %p1818_p3 = pnand %p1817_p2, %p1811_p13 }
  0x43   :  { %1821 = shalt.err (!%p1818_p3)
}
  0x44   :  { %47 = dma.hbm_to_vmem [thread:$0]  %s2083_s2, 12800, %s42_s30, [#allocation6], %s1877_s16, %s1877_s16, %s1878_s17  }
  0x45   :  { %s1822_s20 = scalar_lea.hbm %s2085_s4, 768 }
  0x46   :  { %p1823_p4 = scmp.ne.s32.totalorder %s2085_s4, %s1822_s20  ;;  %p1826_p5 = scmp.lt.u32.totalorder %s1822_s20, %s2085_s4 }
  0x48   :  { %p1828_p6 = pnand %p1826_p5, %p1823_p4 }
  0x4a   :  { %1831 = shalt.err (!%p1828_p6)
}
  0x4b   :  { %s1832_s25 = scalar_lea.vmem %s66_s7, 768  ;;  %p1837_p8 = scmp.lt.s32.totalorder %s66_s7, %s66_s7 }
  0x4c   :  { %p1833_p7 = scmp.ne.s32.totalorder %s66_s7, %s1832_s25  ;;  %p1838_p9 = scmp.lt.s32.totalorder %s1832_s25, %s1832_s25 }
  0x4e   :  { %p1839_p10 = por %p1838_p9, %p1837_p8 }
  0x50   :  { %p1840_p11 = pnand %p1839_p10, %p1833_p7 }
  0x52   :  { %1843 = shalt.err (!%p1840_p11)
}
  0x53   :  { %s1881_s2 = smov 256   ;;  %s1882_s16 = smov 16  }
  0x54   :  { %71 = dma.hbm_to_vmem [thread:$0]  %s2085_s4, 768, %s66_s7, [#allocation9], %s1881_s2, %s1881_s2, %s1882_s16  }
  0x55   :  { %1866 = dma.done.wait [#allocation3], 256  }
  0x56   :  { %1867 = vsyncadd [#allocation3], 4294967040 }
  0x57   :  { %1868 = dma.done.wait [#allocation6], 12864  }
  0x58   :  { %1869 = vsyncadd [#allocation6], 4294954432 }
  0x59   :  { %1870 = dma.done.wait [#allocation9], 4864  }
  0x5a   :  { %1871 = vsyncadd [#allocation9], 4294962432  ;;  %v1528_v0 = vld [vmem:[#allocation7 + $0x4] ss:$8 sps:$4 sm:$0xff]   ;;  %v1532_v2 = vld [vmem:[#allocation7] ss:$8 sps:$4 sm:$0xff]   ;;  %v146_v22 = vlaneseq }
  0x5b   :  { %v1530_v1 = vld [vmem:[#allocation7 + $0x104] ss:$8 sps:$4 sm:$0xff]   ;;  %429 = vmatprep.subr.bf16.mxu0 %v1528_v0  ;;  %v1533_v3 = vld [vmem:[#allocation7 + $0x100] ss:$8 sps:$4 sm:$0xff]   ;;  %v1534_v4 = vld [vmem:[#allocation7 + $0x14] ss:$8 sps:$4 sm:$0xff]  }
  0x5c   :  { %470 = vmatprep.subr.bf16.mxu1 %v1530_v1  ;;  %430 = vmatpush1.bf16.msra.mxu0 %v1532_v2  ;;  %v1536_v5 = vld [vmem:[#allocation7 + $0x114] ss:$8 sps:$4 sm:$0xff]   ;;  %v1538_v6 = vld [vmem:[#allocation7 + $0x10] ss:$8 sps:$4 sm:$0xff]   ;;  %v1540_v8 = vld [vmem:[#allocation7 + $0x24] ss:$8 sps:$4 sm:$0xff]  }
  0x5d   :  { %471 = vmatpush1.bf16.msra.mxu1 %v1533_v3  ;;  %431 = vmatprep.subr.bf16.mxu0 %v1534_v4  ;;  %v1539_v7 = vld [vmem:[#allocation7 + $0x110] ss:$8 sps:$4 sm:$0xff]   ;;  %v1542_v9 = vld [vmem:[#allocation7 + $0x124] ss:$8 sps:$4 sm:$0xff]   ;;  %v1544_v10 = vld [vmem:[#allocation7 + $0x20] ss:$8 sps:$4 sm:$0xff]  }
  0x5e   :  { %472 = vmatprep.subr.bf16.mxu1 %v1536_v5  ;;  %v1545_v11 = vld [vmem:[#allocation7 + $0x120] ss:$8 sps:$4 sm:$0xff]   ;;  %v1546_v12 = vld [vmem:[#allocation7 + $0x34] ss:$8 sps:$4 sm:$0xff]   ;;  %v1550_v14 = vld [vmem:[#allocation7 + $0x30] ss:$8 sps:$4 sm:$0xff]  }
  0x5f   :  { %v1548_v13 = vld [vmem:[#allocation7 + $0x134] ss:$8 sps:$4 sm:$0xff]   ;;  %v1551_v15 = vld [vmem:[#allocation7 + $0x130] ss:$8 sps:$4 sm:$0xff]   ;;  %v1552_v16 = vld [vmem:[#allocation7 + $0x44] ss:$8 sps:$4 sm:$0xff]  }
  0x60   :  { %432 = vmatpush1.bf16.msra.mxu0 %v1538_v6  ;;  %v1554_v17 = vld [vmem:[#allocation7 + $0x144] ss:$8 sps:$4 sm:$0xff]   ;;  %v1556_v18 = vld [vmem:[#allocation7 + $0x40] ss:$8 sps:$4 sm:$0xff]   ;;  %v1883_v20 = vmov 1983009808  }
  0x61   :  { %473 = vmatpush1.bf16.msra.mxu1 %v1539_v7  ;;  %433 = vmatprep.subr.bf16.mxu0 %v1540_v8  ;;  %v1557_v19 = vld [vmem:[#allocation7 + $0x140] ss:$8 sps:$4 sm:$0xff]   ;;  %v144_v21 = vunpack.c.l.s4 %v1883_v20  ;;  %v1558_v23 = vld [vmem:[#allocation7 + $0x54] ss:$8 sps:$4 sm:$0xff]   ;;  %v1562_v25 = vld [vmem:[#allocation7 + $0x50] ss:$8 sps:$4 sm:$0xff]  }
  0x62   :  { %474 = vmatprep.subr.bf16.mxu1 %v1542_v9  ;;  %v1560_v24 = vld [vmem:[#allocation7 + $0x154] ss:$8 sps:$4 sm:$0xff]   ;;  %v1984_v27 = vshrl.u32 %v146_v22, 7  ;;  %v1563_v28 = vld [vmem:[#allocation7 + $0x150] ss:$8 sps:$4 sm:$0xff]   ;;  %vm425_vm0 = vcmask 130048  }
  0x63   :  { %v145_v26 = vunpack.c.0.s8 %v144_v21  ;;  %v1564_v29 = vld [vmem:[#allocation7 + $0x64] ss:$8 sps:$4 sm:$0xff]   ;;  %v1568_v31 = vld [vmem:[#allocation7 + $0x60] ss:$8 sps:$4 sm:$0xff]   ;;  %v1570_v33 = vld [vmem:[#allocation7 + $0x74] ss:$8 sps:$4 sm:$0xff]  }
  0x64   :  { %434 = vmatpush1.bf16.msra.mxu0 %v1544_v10  ;;  %v1566_v30 = vld [vmem:[#allocation7 + $0x164] ss:$8 sps:$4 sm:$0xff]   ;;  %v1569_v32 = vld [vmem:[#allocation7 + $0x160] ss:$8 sps:$4 sm:$0xff]   ;;  %v1572_v36 = vld [vmem:[#allocation7 + $0x174] ss:$8 sps:$4 sm:$0xff]  }
  0x65   :  { %475 = vmatpush1.bf16.msra.mxu1 %v1545_v11  ;;  %435 = vmatprep.subr.bf16.mxu0 %v1546_v12  ;;  %v1987_v34 = vsub.s32 %v145_v26, %v1984_v27  ;;  %v88_v35 = vld [vmem:[#allocation2] sm:$0xff]  ;;  %v1580_v47 = vld [vmem:[#allocation7 + $0x80] ss:$8 sps:$4 sm:$0xff]   ;;  %v1583_v50 = vld [vmem:[#allocation7 + $0x94] ss:$8 sps:$4 sm:$0xff]   ;;  %vm511_vm1 = vcmask 1041408  }
  0x66   :  { %476 = vmatprep.subr.bf16.mxu1 %v1548_v13  ;;  %v142_v37 = vcombine.high %v88_v35, %v88_v35  ;;  %v1574_v39 = vld [vmem:[#allocation7 + $0x70] ss:$8 sps:$4 sm:$0xff]   ;;  %v1576_v43 = vld [vmem:[#allocation7 + $0x84] ss:$8 sps:$4 sm:$0xff]   ;;  %v1581_v48 = vld [vmem:[#allocation7 + $0x180] ss:$8 sps:$4 sm:$0xff]  }
  0x67   :  { %v1990_v38 = vrot.slane %v88_v35, %v1987_v34  ;;  %v1575_v42 = vld [vmem:[#allocation7 + $0x170] ss:$8 sps:$4 sm:$0xff]   ;;  %v1578_v44 = vld [vmem:[#allocation7 + $0x184] ss:$8 sps:$4 sm:$0xff]   ;;  %v1587_v51 = vld [vmem:[#allocation7 + $0x194] ss:$8 sps:$4 sm:$0xff]  }
  0x68   :  { %436 = vmatpush1.bf16.msra.mxu0 %v1550_v14  ;;  %v156_v40 = vrot.slane %v142_v37, %v1987_v34  ;;  %v1585_v53 = vld [vmem:[#allocation7 + $0x190] ss:$8 sps:$4 sm:$0xff]   ;;  %v1589_v55 = vld [vmem:[#allocation7 + $0xa4] ss:$8 sps:$4 sm:$0xff]   ;;  %v1591_v57 = vld [vmem:[#allocation7 + $0x1a0] ss:$8 sps:$4 sm:$0xff]  }
  0x69   :  { %477 = vmatpush1.bf16.msra.mxu1 %v1551_v15  ;;  %437 = vmatprep.subr.bf16.mxu0 %v1552_v16  ;;  %v157_v41 = vcombine.high %v1990_v38, %v1990_v38  ;;  %v1588_v54 = vld [vmem:[#allocation7 + $0x90] ss:$8 sps:$4 sm:$0xff]   ;;  %v1593_v56 = vld [vmem:[#allocation7 + $0x1a4] ss:$8 sps:$4 sm:$0xff]   ;;  %v1594_v58 = vld [vmem:[#allocation7 + $0xa0] ss:$8 sps:$4 sm:$0xff]  }
  0x6a   :  { %478 = vmatprep.subr.bf16.mxu1 %v1554_v17  ;;  %v158_v45 = vcombine.high %v156_v40, %v156_v40  ;;  %v165_v52 = vpack.c.bf16 %v156_v40, %v156_v40  ;;  %v1595_v59 = vld [vmem:[#allocation7 + $0xb4] ss:$8 sps:$4 sm:$0xff]   ;;  %v1597_v61 = vld [vmem:[#allocation7 + $0x1b0] ss:$8 sps:$4 sm:$0xff]   ;;  %v1601_v63 = vld [vmem:[#allocation7 + $0xc4] ss:$8 sps:$4 sm:$0xff]   ;;  %v163_v17 = vpack.c.bf16 %v1990_v38, %v1990_v38 }
  0x6b   :  { %v164_v46 = vpack.c.bf16 %v157_v41, %v157_v41  ;;  %v1599_v60 = vld [vmem:[#allocation7 + $0x1b4] ss:$8 sps:$4 sm:$0xff]   ;;  %v1600_v62 = vld [vmem:[#allocation7 + $0xb0] ss:$8 sps:$4 sm:$0xff]   ;;  %v1605_v0 = vld [vmem:[#allocation7 + $0x1c4] ss:$8 sps:$4 sm:$0xff]  }
  0x6c   :  { %438 = vmatpush1.bf16.msra.mxu0 %v1556_v18  ;;  %v166_v49 = vpack.c.bf16 %v158_v45, %v158_v45  ;;  %v1603_v1 = vld [vmem:[#allocation7 + $0x1c0] ss:$8 sps:$4 sm:$0xff]   ;;  %v1607_v3 = vld [vmem:[#allocation7 + $0xd4] ss:$8 sps:$4 sm:$0xff]   ;;  %v1609_v5 = vld [vmem:[#allocation7 + $0x1d0] ss:$8 sps:$4 sm:$0xff]  }
  0x6d   :  { %479 = vmatpush1.bf16.msra.mxu1 %v1557_v19  ;;  %439 = vmatprep.subr.bf16.mxu0 %v1558_v23  ;;  %v1606_v2 = vld [vmem:[#allocation7 + $0xc0] ss:$8 sps:$4 sm:$0xff]   ;;  %v1611_v4 = vld [vmem:[#allocation7 + $0x1d4] ss:$8 sps:$4 sm:$0xff]   ;;  %v1612_v6 = vld [vmem:[#allocation7 + $0xd0] ss:$8 sps:$4 sm:$0xff]  }
  0x6e   :  { %480 = vmatprep.subr.bf16.mxu1 %v1560_v24  ;;  %461 = vmatprep.mubr.bf16.mxu0 %v164_v46  ;;  %v1613_v7 = vld [vmem:[#allocation7 + $0xe4] ss:$8 sps:$4 sm:$0xff]   ;;  %v1615_v9 = vld [vmem:[#allocation7 + $0x1e0] ss:$8 sps:$4 sm:$0xff]   ;;  %v1619_v11 = vld [vmem:[#allocation7 + $0xf4] ss:$8 sps:$4 sm:$0xff]  }
  0x6f   :  { %1419 = vmatprep.mubr.msk.bf16.mxu1 %vm425_vm0, %v166_v49  ;;  %v1617_v8 = vld [vmem:[#allocation7 + $0x1e4] ss:$8 sps:$4 sm:$0xff]   ;;  %v1618_v10 = vld [vmem:[#allocation7 + $0xe0] ss:$8 sps:$4 sm:$0xff]   ;;  %v1623_v12 = vld [vmem:[#allocation7 + $0x1f4] ss:$8 sps:$4 sm:$0xff]  }
  0x70   :  { %440 = vmatpush1.bf16.msra.mxu0 %v1562_v25  ;;  %v1621_v13 = vld [vmem:[#allocation7 + $0x1f0] ss:$8 sps:$4 sm:$0xff]   ;;  %v1627_v15 = vld [vmem:[#allocation7 + $0x204] ss:$8 sps:$4 sm:$0xff]   ;;  %v1625_v18 = vld [vmem:[#allocation7 + $0x200] ss:$8 sps:$4 sm:$0xff]  }
  0x71   :  { %481 = vmatpush1.bf16.msra.mxu1 %v1563_v28  ;;  %441 = vmatprep.subr.bf16.mxu0 %v1564_v29  ;;  %v1624_v14 = vld [vmem:[#allocation7 + $0xf0] ss:$8 sps:$4 sm:$0xff]   ;;  %v1630_v16 = vld [vmem:[#allocation8 + $0x4] ss:$8 sps:$4 sm:$0xff]   ;;  %v1628_v19 = vld [vmem:[#allocation8] ss:$8 sps:$4 sm:$0xff]  }
  0x72   :  { %482 = vmatprep.subr.bf16.mxu1 %v1566_v30  ;;  %v1633_v20 = vld [vmem:[#allocation7 + $0x214] ss:$8 sps:$4 sm:$0xff]   ;;  %v1631_v23 = vld [vmem:[#allocation7 + $0x210] ss:$8 sps:$4 sm:$0xff]   ;;  %v1639_v26 = vld [vmem:[#allocation7 + $0x224] ss:$8 sps:$4 sm:$0xff]  }
  0x73   :  { %v1636_v21 = vld [vmem:[#allocation8 + $0x14] ss:$8 sps:$4 sm:$0xff]   ;;  %v1634_v24 = vld [vmem:[#allocation8 + $0x10] ss:$8 sps:$4 sm:$0xff]   ;;  %v1642_v28 = vld [vmem:[#allocation8 + $0x24] ss:$8 sps:$4 sm:$0xff]  }
  0x74   :  { %442 = vmatpush1.bf16.msra.mxu0 %v1568_v31  ;;  %v1998_v22 = vld [vmem:[#allocation2 + $0x8] sm:$0xff]  ;;  %v1637_v30 = vld [vmem:[#allocation7 + $0x220] ss:$8 sps:$4 sm:$0xff]   ;;  %v1651_v38 = vld [vmem:[#allocation7 + $0x244] ss:$8 sps:$4 sm:$0xff]   ;;  %s1884_s4 = smov [#allocation11]  }
  0x75   :  { %483 = vmatpush1.bf16.msra.mxu1 %v1569_v32  ;;  %443 = vmatprep.subr.bf16.mxu0 %v1570_v33  ;;  %v2002_v25 = vrot.slane %v1998_v22, %v1987_v34  ;;  %v1640_v31 = vld [vmem:[#allocation8 + $0x20] ss:$8 sps:$4 sm:$0xff]   ;;  %v1645_v33 = vld [vmem:[#allocation7 + $0x234] ss:$8 sps:$4 sm:$0xff]   ;;  %v1646_v37 = vld [vmem:[#allocation8 + $0x30] ss:$8 sps:$4 sm:$0xff]  }
  0x76   :  { %484 = vmatprep.subr.bf16.mxu1 %v1572_v36  ;;  %v1648_v35 = vld [vmem:[#allocation8 + $0x34] ss:$8 sps:$4 sm:$0xff]   ;;  %v1643_v36 = vld [vmem:[#allocation7 + $0x230] ss:$8 sps:$4 sm:$0xff]   ;;  %v1649_v40 = vld [vmem:[#allocation7 + $0x240] ss:$8 sps:$4 sm:$0xff]  }
  0x77   :  { %v637_v29 = vcombine.high %v2002_v25, %v2002_v25  ;;  %v1652_v41 = vld [vmem:[#allocation8 + $0x40] ss:$8 sps:$4 sm:$0xff]   ;;  %v1658_v45 = vld [vmem:[#allocation8 + $0x50] ss:$8 sps:$4 sm:$0xff]   ;;  %v1663_v46 = vld [vmem:[#allocation7 + $0x264] ss:$8 sps:$4 sm:$0xff]  }
  0x78   :  { %444 = vmatpush1.bf16.msra.mxu0 %v1574_v39  ;;  %v1654_v39 = vld [vmem:[#allocation8 + $0x44] ss:$8 sps:$4 sm:$0xff]   ;;  %s1358_s27 = sshll.u32 %s1884_s4, 4  ;;  %s1359_s27 = int_to_ptr.vmem [resolvable:$true] %s1358_s27 }
  0x79   :  { %485 = vmatpush1.bf16.msra.mxu1 %v1575_v42  ;;  %445 = vmatprep.subr.bf16.mxu0 %v1576_v43  ;;  %v644_v32 = vpack.c.bf16 %v637_v29, %v637_v29  ;;  %v1657_v42 = vld [vmem:[#allocation7 + $0x254] ss:$8 sps:$4 sm:$0xff]   ;;  %v1719_v29 = vld [vmem:[#allocation8 + $0xf0] ss:$8 sps:$4 sm:$0xff]   ;;  %s1844_s3 = scalar_lea.vmem %s1359_s27, 192  ;;  %p1849_p13 = scmp.lt.s32.totalorder %s1359_s27, %s1359_s27 }
  0x7a   :  { %486 = vmatprep.subr.bf16.mxu1 %v1578_v44  ;;  %v1660_v43 = vld [vmem:[#allocation8 + $0x54] ss:$8 sps:$4 sm:$0xff]   ;;  %v1655_v44 = vld [vmem:[#allocation7 + $0x250] ss:$8 sps:$4 sm:$0xff]   ;;  %p1845_p12 = scmp.ne.s32.totalorder %s1359_s27, %s1844_s3  ;;  %p1850_p0 = scmp.lt.s32.totalorder %s1844_s3, %s1844_s3 }
  0x7c   :  { %446 = vmatpush1.bf16.msra.mxu0 %v1580_v47  ;;  %v1666_v47 = vld [vmem:[#allocation8 + $0x64] ss:$8 sps:$4 sm:$0xff]   ;;  %p1851_p1 = por %p1850_p0, %p1849_p13 }
  0x7d   :  { %487 = vmatpush1.bf16.msra.mxu1 %v1581_v48  ;;  %447 = vmatprep.subr.bf16.mxu0 %v1583_v50  ;;  %v2006_v48 = vld.sshfl [vmem:[#allocation5] sm:$0x33 pattern:$0x76325410]  ;;  %v1661_v50 = vld [vmem:[#allocation7 + $0x260] ss:$8 sps:$4 sm:$0xff]  }
  0x7e   :  { %908 = vmatprep.subr.bf16.mxu1 %v1587_v51  ;;  %v1086_v49 = vcombine.high %v2006_v48, %v2006_v48  ;;  %v1664_v51 = vld [vmem:[#allocation8 + $0x60] ss:$8 sps:$4 sm:$0xff]   ;;  %p1852_p2 = pnand %p1851_p1, %p1845_p12 }
  0x80   :  { %503 = vmatmul.mubr.bf16.vlgmr.msra.gmra.mrb[0].mxu1 %v165_v52  ;;  %448 = vmatpush1.bf16.msra.mxu0 %v1588_v54  ;;  %v1669_v52 = vld [vmem:[#allocation7 + $0x274] ss:$8 sps:$4 sm:$0xff]   ;;  %v1090_v54 = vpack.c.bf16 %v1086_v49, %v1086_v49 }
  0x81   :  { %909 = vmatpush1.bf16.msra.mxu1 %v1585_v53  ;;  %449 = vmatprep.subr.bf16.mxu0 %v1589_v55  ;;  %v1672_v53 = vld [vmem:[#allocation8 + $0x74] ss:$8 sps:$4 sm:$0xff]   ;;  %v622_v55 = vcombine.high %v1998_v22, %v1998_v22  ;;  %v1715_v22 = vld [vmem:[#allocation8 + $0xe4] ss:$8 sps:$4 sm:$0xff]  }
  0x82   :  { %910 = vmatprep.subr.bf16.mxu1 %v1593_v56  ;;  %940 = vmatprep.mubr.bf16.mxu1 %v644_v32  ;;  %v1667_v56 = vld [vmem:[#allocation7 + $0x270] ss:$8 sps:$4 sm:$0xff]   ;;  %v1722_v32 = vld [vmem:[#allocation7 + $0x300] ss:$8 sps:$4 sm:$0xff]  }
  0x84   :  { %450 = vmatpush1.bf16.msra.mxu0 %v1594_v58  ;;  %v1675_v58 = vld [vmem:[#allocation7 + $0x284] ss:$8 sps:$4 sm:$0xff]  }
  0x85   :  { %911 = vmatpush1.bf16.msra.mxu1 %v1591_v57  ;;  %451 = vmatprep.subr.bf16.mxu0 %v1595_v59  ;;  %v1670_v57 = vld [vmem:[#allocation8 + $0x70] ss:$8 sps:$4 sm:$0xff]   ;;  %v1678_v59 = vld [vmem:[#allocation8 + $0x84] ss:$8 sps:$4 sm:$0xff]  }
  0x86   :  { %912 = vmatprep.subr.bf16.mxu1 %v1599_v60  ;;  %v2013_v60 = vrot.slane %v622_v55, %v1987_v34  ;;  %v1688_v34 = vld [vmem:[#allocation7 + $0x2a4] ss:$8 sps:$4 sm:$0xff]  }
  0x88   :  { %452 = vmatpush1.bf16.msra.mxu0 %v1600_v62  ;;  %v1676_v62 = vld [vmem:[#allocation8 + $0x80] ss:$8 sps:$4 sm:$0xff]  }
  0x89   :  { %913 = vmatpush1.bf16.msra.mxu1 %v1597_v61  ;;  %453 = vmatprep.subr.bf16.mxu0 %v1601_v63  ;;  %v1673_v61 = vld [vmem:[#allocation7 + $0x280] ss:$8 sps:$4 sm:$0xff]   ;;  %v1682_v63 = vld [vmem:[#allocation7 + $0x294] ss:$8 sps:$4 sm:$0xff]  }
  0x8a   :  { %914 = vmatprep.subr.bf16.mxu1 %v1605_v0  ;;  %v1685_v0 = vld [vmem:[#allocation8 + $0x94] ss:$8 sps:$4 sm:$0xff]  }
  0x8c   :  { %454 = vmatpush1.bf16.msra.mxu0 %v1606_v2  ;;  %v643_v2 = vpack.c.bf16 %v2002_v25, %v2002_v25  ;;  %v1718_v25 = vld [vmem:[#allocation7 + $0x2f4] ss:$8 sps:$4 sm:$0xff]  }
  0x8d   :  { %915 = vmatpush1.bf16.msra.mxu1 %v1603_v1  ;;  %455 = vmatprep.subr.bf16.mxu0 %v1607_v3  ;;  %v638_v1 = vcombine.high %v2013_v60, %v2013_v60  ;;  %v1680_v3 = vld [vmem:[#allocation7 + $0x290] ss:$8 sps:$4 sm:$0xff]  }
  0x8e   :  { %916 = vmatprep.subr.bf16.mxu1 %v1611_v4  ;;  %v1683_v4 = vld [vmem:[#allocation8 + $0x90] ss:$8 sps:$4 sm:$0xff]  }
  0x90   :  { %456 = vmatpush1.bf16.msra.mxu0 %v1612_v6  ;;  %v646_v6 = vpack.c.bf16 %v638_v1, %v638_v1 }
  0x91   :  { %917 = vmatpush1.bf16.msra.mxu1 %v1609_v5  ;;  %457 = vmatprep.subr.bf16.mxu0 %v1613_v7  ;;  %v1691_v5 = vld [vmem:[#allocation8 + $0xa4] ss:$8 sps:$4 sm:$0xff]   ;;  %v1686_v7 = vld [vmem:[#allocation7 + $0x2a0] ss:$8 sps:$4 sm:$0xff]  }
  0x92   :  { %918 = vmatprep.subr.bf16.mxu1 %v1617_v8  ;;  %v1689_v8 = vld [vmem:[#allocation8 + $0xa0] ss:$8 sps:$4 sm:$0xff]  }
  0x94   :  { %458 = vmatpush1.bf16.msra.mxu0 %v1618_v10  ;;  %v1697_v10 = vld [vmem:[#allocation8 + $0xb4] ss:$8 sps:$4 sm:$0xff]  }
  0x95   :  { %919 = vmatpush1.bf16.msra.mxu1 %v1615_v9  ;;  %459 = vmatprep.subr.bf16.mxu0 %v1619_v11  ;;  %v1694_v9 = vld [vmem:[#allocation7 + $0x2b4] ss:$8 sps:$4 sm:$0xff]   ;;  %v1692_v11 = vld [vmem:[#allocation7 + $0x2b0] ss:$8 sps:$4 sm:$0xff]  }
  0x96   :  { %920 = vmatprep.subr.bf16.mxu1 %v1623_v12  ;;  %v1695_v12 = vld [vmem:[#allocation8 + $0xb0] ss:$8 sps:$4 sm:$0xff]  }
  0x98   :  { %460 = vmatpush1.bf16.msra.mxu0 %v1624_v14  ;;  %v1703_v14 = vld [vmem:[#allocation8 + $0xc4] ss:$8 sps:$4 sm:$0xff]  }
  0x99   :  { %921 = vmatpush1.bf16.msra.mxu1 %v1621_v13  ;;  %1259 = vmatprep.subr.bf16.mxu0 %v1630_v16  ;;  %v1700_v13 = vld [vmem:[#allocation7 + $0x2c4] ss:$8 sps:$4 sm:$0xff]   ;;  %v1701_v16 = vld [vmem:[#allocation8 + $0xc0] ss:$8 sps:$4 sm:$0xff]  }
  0x9a   :  { %922 = vmatprep.subr.bf16.mxu1 %v1627_v15  ;;  %v1698_v15 = vld [vmem:[#allocation7 + $0x2c0] ss:$8 sps:$4 sm:$0xff]  }
  0x9b   :  { %462 = vmatmul.mubr.bf16.vlgmr.msra.gmra.mrb[0].mxu0 %v163_v17  ;;  %v1706_v17 = vld [vmem:[#allocation7 + $0x2d4] ss:$8 sps:$4 sm:$0xff]  }
  0x9c   :  { %1260 = vmatpush1.bf16.msra.mxu0 %v1628_v19  ;;  %1291 = vmatprep.mubr.bf16.mxu0 %v1090_v54  ;;  %v1704_v19 = vld [vmem:[#allocation7 + $0x2d0] ss:$8 sps:$4 sm:$0xff]  }
  0x9d   :  { %923 = vmatpush1.bf16.msra.mxu1 %v1625_v18  ;;  %1261 = vmatprep.subr.bf16.mxu0 %v1636_v21  ;;  %v1709_v18 = vld [vmem:[#allocation8 + $0xd4] ss:$8 sps:$4 sm:$0xff]   ;;  %v1712_v21 = vld [vmem:[#allocation7 + $0x2e4] ss:$8 sps:$4 sm:$0xff]  }
  0x9e   :  { %924 = vmatprep.subr.bf16.mxu1 %v1633_v20  ;;  %v1707_v20 = vld [vmem:[#allocation8 + $0xd0] ss:$8 sps:$4 sm:$0xff]  }
  0xa0   :  { %1262 = vmatpush1.bf16.msra.mxu0 %v1634_v24  ;;  %v1713_v24 = vld [vmem:[#allocation8 + $0xe0] ss:$8 sps:$4 sm:$0xff]  }
  0xa1   :  { %925 = vmatpush1.bf16.msra.mxu1 %v1631_v23  ;;  %1263 = vmatprep.subr.bf16.mxu0 %v1642_v28  ;;  %v1710_v23 = vld [vmem:[#allocation7 + $0x2e0] ss:$8 sps:$4 sm:$0xff]   ;;  %v1716_v28 = vld [vmem:[#allocation7 + $0x2f0] ss:$8 sps:$4 sm:$0xff]  }
  0xa2   :  { %926 = vmatprep.subr.bf16.mxu1 %v1639_v26  ;;  %v1721_v26 = vld [vmem:[#allocation8 + $0xf4] ss:$8 sps:$4 sm:$0xff]  }
  0xa4   :  { %1264 = vmatpush1.bf16.msra.mxu0 %v1640_v31  ;;  %v1089_v31 = vpack.c.bf16 %v2006_v48, %v2006_v48 }
  0xa5   :  { %927 = vmatpush1.bf16.msra.mxu1 %v1637_v30  ;;  %1265 = vmatprep.subr.bf16.mxu0 %v1648_v35  ;;  %v1724_v30 = vld [vmem:[#allocation7 + $0x304] ss:$8 sps:$4 sm:$0xff]   ;;  %v1725_v35 = vld [vmem:[#allocation7 + $0x310] ss:$8 sps:$4 sm:$0xff]  }
  0xa6   :  { %928 = vmatprep.subr.bf16.mxu1 %v1645_v33  ;;  %v1727_v33 = vld [vmem:[#allocation7 + $0x314] ss:$8 sps:$4 sm:$0xff]  }
  0xa8   :  { %1266 = vmatpush1.bf16.msra.mxu0 %v1646_v37 }
  0xa9   :  { %929 = vmatpush1.bf16.msra.mxu1 %v1643_v36  ;;  %1267 = vmatprep.subr.bf16.mxu0 %v1654_v39  ;;  %v645_v36 = vpack.c.bf16 %v2013_v60, %v2013_v60 }
  0xaa   :  { %930 = vmatprep.subr.bf16.mxu1 %v1651_v38 }
  0xac   :  { %1268 = vmatpush1.bf16.msra.mxu0 %v1652_v41  ;;  %v169_v41 = vsub.s32 0, %v1984_v27 }
  0xad   :  { %931 = vmatpush1.bf16.msra.mxu1 %v1649_v40  ;;  %1269 = vmatprep.subr.bf16.mxu0 %v1660_v43  ;;  %v2027_v43 = vld [vmem:[#allocation10 + $0x8] sm:$0xff] }
  0xae   :  { %932 = vmatprep.subr.bf16.mxu1 %v1657_v42  ;;  %v2025_v42 = vld [vmem:[#allocation10] sm:$0xff] }
  0xb0   :  { %1270 = vmatpush1.bf16.msra.mxu0 %v1658_v45  ;;  %v174_v45 = vrot.slane %v2027_v43, %v169_v41 }
  0xb1   :  { %933 = vmatpush1.bf16.msra.mxu1 %v1655_v44  ;;  %1271 = vmatprep.subr.bf16.mxu0 %v1666_v47  ;;  %v170_v44 = vrot.slane %v2025_v42, %v169_v41 }
  0xb2   :  { %934 = vmatprep.subr.bf16.mxu1 %v1663_v46 }
  0xb4   :  { %1272 = vmatpush1.bf16.msra.mxu0 %v1664_v51 }
  0xb5   :  { %935 = vmatpush1.bf16.msra.mxu1 %v1661_v50  ;;  %1273 = vmatprep.subr.bf16.mxu0 %v1672_v53 }
  0xb6   :  { %936 = vmatprep.subr.bf16.mxu1 %v1669_v52 }
  0xb8   :  { %1274 = vmatpush1.bf16.msra.mxu0 %v1670_v57  ;;  %v2033_v57 = vld [vmem:[#allocation10 + $0x20] sm:$0xff] }
  0xb9   :  { %937 = vmatpush1.bf16.msra.mxu1 %v1667_v56  ;;  %1275 = vmatprep.subr.bf16.mxu0 %v1678_v59  ;;  %v1094_v59 = vrot.slane %v2033_v57, %v169_v41 }
  0xba   :  { %938 = vmatprep.subr.bf16.mxu1 %v1675_v58  ;;  %v2035_v58 = vld [vmem:[#allocation10 + $0x28] sm:$0xff] }
  0xbb   :  { %v1098_v60 = vrot.slane %v2035_v58, %v169_v41 }
  0xbc   :  { %1276 = vmatpush1.bf16.msra.mxu0 %v1676_v62 }
  0xbd   :  { %939 = vmatpush1.bf16.msra.mxu1 %v1673_v61  ;;  %1277 = vmatprep.subr.bf16.mxu0 %v1685_v0 }
  0xbe   :  { %949 = vmatprep.subr.bf16.mxu1 %v1682_v63 }
  0xc0   :  { %941 = vmatmul.mubr.bf16.vlgmr.msra.gmra.mrb[4].mxu1 %v643_v2  ;;  %1278 = vmatpush1.bf16.msra.mxu0 %v1683_v4  ;;  %v2039_v2 = vld [vmem:[#allocation10 + $0x10] sm:$0xff] }
  0xc1   :  { %950 = vmatpush1.bf16.msra.mxu1 %v1680_v3  ;;  %1279 = vmatprep.subr.bf16.mxu0 %v1691_v5 }
  0xc2   :  { %951 = vmatprep.subr.bf16.mxu1 %v1688_v34  ;;  %1471 = vmatprep.mubr.msk.bf16.mxu1 %vm425_vm0, %v646_v6  ;;  %v2042_v34 = vld [vmem:[#allocation10 + $0x18] sm:$0xff] }
  0xc4   :  { %1280 = vmatpush1.bf16.msra.mxu0 %v1689_v8  ;;  %v654_v8 = vrot.slane %v2042_v34, %v169_v41 }
  0xc5   :  { %952 = vmatpush1.bf16.msra.mxu1 %v1686_v7  ;;  %1281 = vmatprep.subr.bf16.mxu0 %v1697_v10  ;;  %v650_v7 = vrot.slane %v2039_v2, %v169_v41 }
  0xc6   :  { %953 = vmatprep.subr.bf16.mxu1 %v1694_v9 }
  0xc8   :  { %1282 = vmatpush1.bf16.msra.mxu0 %v1695_v12 }
  0xc9   :  { %954 = vmatpush1.bf16.msra.mxu1 %v1692_v11  ;;  %1283 = vmatprep.subr.bf16.mxu0 %v1703_v14 }
  0xca   :  { %955 = vmatprep.subr.bf16.mxu1 %v1700_v13 }
  0xcc   :  { %1284 = vmatpush1.bf16.msra.mxu0 %v1701_v16 }
  0xcd   :  { %956 = vmatpush1.bf16.msra.mxu1 %v1698_v15  ;;  %1285 = vmatprep.subr.bf16.mxu0 %v1709_v18 }
  0xce   :  { %957 = vmatprep.subr.bf16.mxu1 %v1706_v17 }
  0xd0   :  { %1286 = vmatpush1.bf16.msra.mxu0 %v1707_v20 }
  0xd1   :  { %958 = vmatpush1.bf16.msra.mxu1 %v1704_v19  ;;  %1287 = vmatprep.subr.bf16.mxu0 %v1715_v22 }
  0xd2   :  { %959 = vmatprep.subr.bf16.mxu1 %v1712_v21 }
  0xd4   :  { %1288 = vmatpush1.bf16.msra.mxu0 %v1713_v24 }
  0xd5   :  { %960 = vmatpush1.bf16.msra.mxu1 %v1710_v23  ;;  %1289 = vmatprep.subr.bf16.mxu0 %v1721_v26 }
  0xd6   :  { %961 = vmatprep.subr.bf16.mxu1 %v1718_v25 }
  0xd8   :  { %1290 = vmatpush1.bf16.msra.mxu0 %v1719_v29 }
  0xd9   :  { %962 = vmatpush1.bf16.msra.mxu1 %v1716_v28 }
  0xda   :  { %963 = vmatprep.subr.bf16.mxu1 %v1724_v30 }
  0xdb   :  { %1292 = vmatmul.mubr.bf16.vlgmr.msra.gmra.mrb[4].mxu0 %v1089_v31 }
  0xdd   :  { %964 = vmatpush1.bf16.msra.mxu1 %v1722_v32 }
  0xde   :  { %965 = vmatprep.subr.bf16.mxu1 %v1727_v33 }
  0xe1   :  { %966 = vmatpush1.bf16.msra.mxu1 %v1725_v35 }
  0xe4   :  { %982 = vmatmul.mubr.bf16.vlgmr.msra.gmra.mrb[4].mxu1 %v645_v36 }
 0x153   :  { %v504_v37 = vpop.f32.mrb[0].mxu1 }
 0x154   :  { %v506_v38 = vpop.f32.mrb[1].mxu1 }
 0x155   :  { %v508_v39 = vpop.f32.mrb[2].mxu1 }
 0x156   :  { %v509_v40 = vpop.f32.mrb[3].mxu1 }
 0x16e   :  { %v463_v46 = vpop.f32.mrb[0].mxu0 }
 0x16f   :  { %v464_v47 = vadd.f32 %v463_v46, %v170_v44  ;;  %v465_v48 = vpop.f32.mrb[1].mxu0 }
 0x170   :  { %v466_v49 = vadd.f32 %v465_v48, %v174_v45  ;;  %v467_v50 = vpop.f32.mrb[2].mxu0 }
 0x171   :  { %v505_v51 = vadd.f32 %v504_v37, %v464_v47  ;;  %v468_v52 = vpop.f32.mrb[3].mxu0 }
 0x172   :  { %v507_v53 = vadd.f32 %v506_v38, %v466_v49  ;;  %v531_v52 = vsub.s32 1, %v1984_v27 }
 0x173   :  { %v512_v54 = vsel %vm511_vm1, %v505_v51, 0.0 }
 0x174   :  { %v513_v55 = vsel %vm511_vm1, %v507_v53, 0.0 }
 0x175   :  { %v514_v56 = vadd.f32 %v513_v55, %v512_v54  ;;  %v532_v54 = vrot.slane %v2025_v42, %v531_v52  ;;  %v536_v55 = vrot.slane %v2027_v43, %v531_v52 }
 0x177   :  { %515 = vadd.xlane.f32.xlu0 %v514_v56 }
 0x1ae   :  { %v1293_v61 = vpop.f32.mrb[4].mxu0 }
 0x1af   :  { %v1294_v62 = vadd.f32 %v1293_v61, %v1094_v59  ;;  %v1295_v63 = vpop.f32.mrb[5].mxu0 }
 0x1b0   :  { %v1296_v0 = vadd.f32 %v1295_v63, %v1098_v60  ;;  %v1297_v1 = vpop.f32.mrb[6].mxu0 }
 0x1b1   :  { %v1300_v3 = vsel %vm511_vm1, %v1294_v62, 0.0  ;;  %v1298_v4 = vpop.f32.mrb[7].mxu0 }
 0x1b2   :  { %v1301_v5 = vsel %vm511_vm1, %v1296_v0, 0.0 }
 0x1b3   :  { %v1302_v6 = vadd.f32 %v1301_v5, %v1300_v3 }
 0x1b5   :  { %1303 = vadd.xlane.f32.xlu1 %v1302_v6 }
 0x1b7   :  { %v983_v9 = vpop.f32.mrb[4].mxu1 }
 0x1b8   :  { %v1511_v10 = vadd.f32 %v983_v9, %v650_v7  ;;  %v985_v11 = vpop.f32.mrb[5].mxu1  ;;  %v1319_v9 = vrot.slane %v2033_v57, %v531_v52 }
 0x1b9   :  { %v1512_v12 = vadd.f32 %v985_v11, %v654_v8  ;;  %v987_v13 = vpop.f32.mrb[6].mxu1 }
 0x1ba   :  { %v988_v14 = vpop.f32.mrb[7].mxu1  ;;  %v990_v15 = vsel %vm511_vm1, %v1511_v10, 0.0 }
 0x1bb   :  { %v991_v16 = vsel %vm511_vm1, %v1512_v12, 0.0 }
 0x1bc   :  { %v992_v17 = vadd.f32 %v991_v16, %v990_v15 }
 0x1be   :  { %993 = vadd.xlane.f32.xlu0 %v992_v17  ;;  %v1009_v17 = vrot.slane %v2039_v2, %v531_v52 }
 0x204   :  { %v516_v18 = vpop.xlane.xlu0 %515 }
 0x205   :  { %v518_v19 = vmul.f32 0.00390625, %v516_v18  ;;  %v1013_v18 = vrot.slane %v2042_v34, %v531_v52 }
 0x207   :  { %v519_v20 = vsub.f32 %v505_v51, %v518_v19  ;;  %v520_v21 = vsub.f32 %v507_v53, %v518_v19  ;;  %v545_v53 = vsub.s32 2, %v1984_v27 }
 0x209   :  { %v521_v22 = vmul.f32 %v519_v20, %v519_v20  ;;  %v522_v23 = vmul.f32 %v520_v21, %v520_v21  ;;  %v546_v56 = vrot.slane %v2025_v42, %v545_v53  ;;  %v550_v59 = vrot.slane %v2027_v43, %v545_v53 }
 0x20a   :  { %v537_v60 = vmul.f32 %v532_v54, %v519_v20  ;;  %v538_v61 = vmul.f32 %v536_v55, %v520_v21  ;;  %v1323_v42 = vrot.slane %v2035_v58, %v531_v52  ;;  %v1337_v11 = vrot.slane %v2035_v58, %v545_v53 }
 0x20b   :  { %v523_v24 = vsel %vm511_vm1, %v521_v22, 0.0  ;;  %v524_v25 = vsel %vm511_vm1, %v522_v23, 0.0  ;;  %v1023_v22 = vrot.slane %v2039_v2, %v545_v53  ;;  %v1027_v23 = vrot.slane %v2042_v34, %v545_v53 }
 0x20c   :  { %v525_v26 = vadd.f32 %v524_v25, %v523_v24 }
 0x20e   :  { %526 = vadd.xlane.f32.xlu1 %v525_v26 }
 0x242   :  { %v1304_v28 = vpop.xlane.xlu1 %1303 }
 0x243   :  { %v1305_v29 = vmul.f32 0.00390625, %v1304_v28 }
 0x245   :  { %v1306_v30 = vsub.f32 %v1294_v62, %v1305_v29  ;;  %v1307_v31 = vsub.f32 %v1296_v0, %v1305_v29 }
 0x247   :  { %v1308_v32 = vmul.f32 %v1306_v30, %v1306_v30  ;;  %v1309_v33 = vmul.f32 %v1307_v31, %v1307_v31  ;;  %v1325_v13 = vmul.f32 %v1323_v42, %v1307_v31 }
 0x249   :  { %v1310_v35 = vsel %vm511_vm1, %v1308_v32, 0.0  ;;  %v1311_v36 = vsel %vm511_vm1, %v1309_v33, 0.0 }
 0x24a   :  { %v1312_v38 = vadd.f32 %v1311_v36, %v1310_v35 }
 0x24b   :  { %v994_v37 = vpop.xlane.xlu0 %993 }
 0x24c   :  { %v995_v39 = vmul.f32 0.00390625, %v994_v37  ;;  %1313 = vadd.xlane.f32.xlu1 %v1312_v38 }
 0x24e   :  { %v996_v40 = vsub.f32 %v1511_v10, %v995_v39  ;;  %v997_v41 = vsub.f32 %v1512_v12, %v995_v39  ;;  %v1333_v10 = vrot.slane %v2033_v57, %v545_v53  ;;  %v1324_v12 = vmul.f32 %v1319_v9, %v1306_v30 }
 0x250   :  { %v998_v44 = vmul.f32 %v996_v40, %v996_v40  ;;  %v999_v45 = vmul.f32 %v997_v41, %v997_v41  ;;  %v1014_v24 = vmul.f32 %v1009_v17, %v996_v40  ;;  %v1015_v57 = vmul.f32 %v1013_v18, %v997_v41 }
 0x252   :  { %v1000_v46 = vsel %vm511_vm1, %v998_v44, 0.0  ;;  %v1001_v47 = vsel %vm511_vm1, %v999_v45, 0.0 }
 0x253   :  { %v1002_v48 = vadd.f32 %v1001_v47, %v1000_v46 }
 0x255   :  { %1003 = vadd.xlane.f32.xlu0 %v1002_v48 }
 0x29b   :  { %v527_v49 = vpop.xlane.xlu1 %526 }
 0x29c   :  { %v528_v50 = vmul.f32 0.00390625, %v527_v49 }
 0x29e   :  { %v539_v51 = vadd.f32 1e-12, %v528_v50 }
 0x2a0   :  { %1728 = vrsqrt.f32 %v539_v51 }
 0x2aa   :  { %v1729_v62 = vpop.eup %1728 }
 0x2ab   :  { %v541_v63 = vmul.f32 %v1729_v62, %v537_v60  ;;  %v542_v0 = vmul.f32 %v1729_v62, %v538_v61 }
 0x2ad   :  { %v551_v1 = vadd.f32 %v546_v56, %v541_v63  ;;  %v552_v3 = vadd.f32 %v550_v59, %v542_v0 }
 0x2af   :  { %v555_v4 = vcombine.low %v551_v1, %v552_v3 }
 0x2b1   :  { %1420 = vst.sshfl [vmem:[#allocation11] sm:$0x33 pattern:$0x76325410] %v555_v4 }
 0x2d9   :  { %v1314_v5 = vpop.xlane.xlu1 %1313 }
 0x2da   :  { %v1315_v6 = vmul.f32 0.00390625, %v1314_v5 }
 0x2dc   :  { %v1326_v27 = vadd.f32 1e-12, %v1315_v6 }
 0x2de   :  { %1730 = vrsqrt.f32 %v1326_v27 }
 0x2e2   :  { %v1004_v7 = vpop.xlane.xlu0 %1003 }
 0x2e3   :  { %v1005_v8 = vmul.f32 0.00390625, %v1004_v7 }
 0x2e5   :  { %v1016_v43 = vadd.f32 1e-12, %v1005_v8 }
 0x2e7   :  { %1732 = vrsqrt.f32 %v1016_v43 }
 0x2e8   :  { %v1731_v14 = vpop.eup %1730 }
 0x2e9   :  { %v1328_v15 = vmul.f32 %v1731_v14, %v1324_v12  ;;  %v1329_v16 = vmul.f32 %v1731_v14, %v1325_v13 }
 0x2eb   :  { %v1338_v19 = vadd.f32 %v1333_v10, %v1328_v15  ;;  %v1339_v20 = vadd.f32 %v1337_v11, %v1329_v16 }
 0x2ed   :  { %v1342_v21 = vcombine.low %v1338_v19, %v1339_v20 }
 0x2ef   :  { %1506 = vst.sshfl [vmem:[#allocation11 + $0x8] sm:$0x33 pattern:$0x76325410] %v1342_v21 }
 0x2f1   :  { %v1733_v58 = vpop.eup %1732 }
 0x2f2   :  { %v1018_v25 = vmul.f32 %v1733_v58, %v1014_v24  ;;  %v1019_v26 = vmul.f32 %v1733_v58, %v1015_v57 }
 0x2f4   :  { %v1028_v28 = vadd.f32 %v1023_v22, %v1018_v25  ;;  %v1029_v29 = vadd.f32 %v1027_v23, %v1019_v26 }
 0x2f6   :  { %v1032_v30 = vcombine.low %v1028_v28, %v1029_v29 }
 0x2f8   :  { %1472 = vst.sshfl [vmem:[#allocation11 + $0x4] sm:$0x33 pattern:$0x76325410] %v1032_v30 }
 0x2f9   :  { %1855 = shalt.err (!%p1852_p2)
}
 0x2fa   :  { %s1856_s30 = scalar_lea.hbm %s2086_s5, 192 }
 0x2fb   :  { %p1857_p3 = scmp.ne.s32.totalorder %s2086_s5, %s1856_s30  ;;  %p1860_p4 = scmp.lt.u32.totalorder %s1856_s30, %s2086_s5 }
 0x2fd   :  { %p1862_p5 = pnand %p1860_p4, %p1857_p3 }
 0x2ff   :  { %1865 = shalt.err (!%p1862_p5)
}
 0x300   :  { %1361 = dma.vmem_to_hbm [thread:$0]  %s1359_s27, 192, %s2086_s5, [#allocation4]  }
 0x301   :  { %1872 = dma.done.wait [#allocation4], 192  }
 0x302   :  { %1873 = vsyncadd [#allocation4], 4294967104 }
 0x303   :  { %1365 = vsyncpa [#allocation3], 1 }
 0x304   :  { %1366 = vsyncpa [#allocation6], 1 }
 0x305   :  { %1367 = vsyncpa [#allocation9], 1 }
 0x306   :  { %1368 = vsyncpa [#allocation4], 1 }

</bundles_post_ra>
